<compile_context>
chip_gen: v7x
topology: tpu7x:2x2x1
jax: 0.10.0
libtpu: 0.0.40
codegen_flags: <defaults>
</compile_context>

<pallas_src>
import functools

import numpy as np
import jax
import jax.numpy as jnp
from jax.experimental import pallas as pl
from jax.experimental.pallas import tpu as pltpu


# ----------------------------------------------------------------- kernel ---

def _conv_bn_relu_kernel(xa_ref, xb_ref, w_ref, b_ref, o_ref, xw_ref, xs_ref,
                         *, taps, cin, tile_ne):
    """Fused stride-1 conv + folded-BN + ReLU for one (image, spatial-tile) step.

    xa_ref : (Cin, TILE_NE)        bf16  window j of the flattened padded image
    xb_ref : (Cin, TILE_NE)        bf16  window j+1 (halo for the tap shifts)
    w_ref  : (Cout, kh*kw*Cin)     bf16  BN-scale-folded, tap-flattened weights
    b_ref  : (Cout, 1)             f32   folded BN bias (beta - mean*scale)
    o_ref  : (Cout, TILE_NE)             output tile (extended/junk-tail layout)
    xw_ref : (Cin, 2*TILE_NE)      bf16  scratch: assembled sliding window
    xs_ref : (kh*kw*Cin, TILE_NE)  bf16  scratch: tap-stacked MXU RHS
    """
    if len(taps) == 1 and taps[0] == 0:
        # 1x1 conv fast path: no tap stacking needed, dot the window directly.
        acc = jnp.dot(w_ref[...], xa_ref[...], preferred_element_type=jnp.float32)
    else:
        # Assemble the 2*TILE_NE-wide window [j*T, (j+2)*T) of the image.
        xw_ref[:, :tile_ne] = xa_ref[...]
        xw_ref[:, tile_ne:] = xb_ref[...]
        # Build the tap-stacked RHS: row block t is the window lane-shifted by
        # taps[t].  All offsets are static -> plain shifted loads / aligned stores.
        for t, k in enumerate(taps):                    # static unroll (kh*kw)
            xs_ref[t * cin:(t + 1) * cin, :] = xw_ref[:, k:k + tile_ne]
        # ONE MXU matmul with K = kh*kw*Cin (instead of kh*kw dots with K=Cin).
        acc = jnp.dot(w_ref[...], xs_ref[...], preferred_element_type=jnp.float32)
    # BN scale is already folded into the weights; epilogue = bias + ReLU.
    o_ref[...] = jnp.maximum(acc + b_ref[...], 0.0).astype(o_ref.dtype)


# ---------------------------------------------------------------- wrapper ---

def _round_up(x, m):
    return (x + m - 1) // m * m


def basic_conv2d(x, weight, bn_scale, bn_bias, *, padding=0, dilation=1,
                 out_dtype=jnp.float32, max_tile_ne=512):
    """BasicConv2d forward: NCHW in, NCHW out.  stride=1 only.

    x        : (B, Cin, H, W)
    weight   : (Cout, Cin, kh, kw)  PyTorch OIHW layout (bias=False)
    bn_scale : (Cout,) = gamma / sqrt(running_var + eps)
    bn_bias  : (Cout,) = beta - running_mean * bn_scale
    """
    # TODO(synk): stride > 1 not implemented (module default stride=1).
    B, Cin, H, W = x.shape
    Cout, Cin_w, kh, kw = weight.shape
    assert Cin_w == Cin

    Hp, Wp = H + 2 * padding, W + 2 * padding
    Hout = Hp - dilation * (kh - 1)
    Wout = Wp - dilation * (kw - 1)
    assert Hout > 0 and Wout > 0
    T = kh * kw
    taps = tuple(i * dilation * Wp + j * dilation
                 for i in range(kh) for j in range(kw))
    max_tap = max(taps)
    NE = Hout * Wp                         # extended (junk-tail) output length

    # ---- spatial tile selection ---------------------------------------------
    # TILE_NE: multiple of 128 (lane-dense stores), >= max_tap+1 (one halo
    # block covers every tap), preferably a divisor of round_up(NE,128) so the
    # junk written stays at the 128-alignment minimum.
    ne_pad = _round_up(NE, 128)
    halo_min = _round_up(max_tap + 1, 128)
    cap = max(max_tile_ne, halo_min)
    tile_ne = 0
    for cand in range(cap, 0, -128):
        if cand >= halo_min and ne_pad % cand == 0:
            tile_ne = cand
            break
    if tile_ne == 0:
        tile_ne = max(min(cap, ne_pad), halo_min)
    num_tiles = -(-ne_pad // tile_ne)
    ne_grid = num_tiles * tile_ne
    P = (num_tiles + 1) * tile_ne          # +1 block read by the halo window

    # ---- wrapper-side layout glue (input-sized only) ------------------------
    xb16 = x.astype(jnp.bfloat16)          # bf16 BEFORE padding: half the traffic
    xp = jnp.pad(xb16, ((0, 0), (0, 0), (padding, padding), (padding, padding)))
    xp = xp.reshape(B, Cin, Hp * Wp)
    xp = jnp.pad(xp, ((0, 0), (0, 0), (0, P - Hp * Wp)))

    # Fold BN scale into the (tiny) conv weights; flatten to a lane-dense
    # (Cout, kh*kw*Cin) slab matching the in-kernel tap stack ordering.
    w_fold = weight.astype(jnp.float32) * bn_scale.astype(jnp.float32)[:, None, None, None]
    w_slab = jnp.transpose(w_fold, (0, 2, 3, 1)).reshape(Cout, T * Cin)
    w_slab = w_slab.astype(jnp.bfloat16)
    bias = bn_bias.reshape(Cout, 1).astype(jnp.float32)

    kernel = functools.partial(_conv_bn_relu_kernel, taps=taps, cin=Cin,
                               tile_ne=tile_ne)

    # Explicit VMEM limit: double-buffered working set with headroom, clamped
    # to [32 MiB (>= every gen's default), 64 MiB (v7x physical ceiling)].
    step_bytes = (2 * 2 * Cin * tile_ne * 2                 # xa + xb tiles
                  + 2 * Cout * _round_up(T * Cin, 128) * 2  # weight slab
                  + 2 * Cout * 128 * 4                      # bias (lane-padded)
                  + 2 * Cout * tile_ne * 4                  # output tile
                  + Cin * 2 * tile_ne * 2                   # window scratch
                  + T * Cin * tile_ne * 2)                  # tap-stack scratch
    vmem_limit = int(min(64 * 2**20, max(32 * 2**20, 4 * step_bytes)))

    y_ext = pl.pallas_call(
        kernel,
        out_shape=jax.ShapeDtypeStruct((B, Cout, ne_grid), out_dtype),
        grid=(B, num_tiles),
        in_specs=[
            # aligned window j of the flattened padded image, and its +1 halo
            pl.BlockSpec((None, Cin, tile_ne), lambda b, j: (b, 0, j)),
            pl.BlockSpec((None, Cin, tile_ne), lambda b, j: (b, 0, j + 1)),
            # grid-invariant operands: constant index maps -> VMEM resident
            pl.BlockSpec((Cout, T * Cin), lambda b, j: (0, 0)),
            pl.BlockSpec((Cout, 1), lambda b, j: (0, 0)),
        ],
        out_specs=pl.BlockSpec((None, Cout, tile_ne), lambda b, j: (b, 0, j)),
        scratch_shapes=[
            pltpu.VMEM((Cin, 2 * tile_ne), jnp.bfloat16),    # sliding window
            pltpu.VMEM((T * Cin, tile_ne), jnp.bfloat16),    # tap-stacked RHS
        ],
        compiler_params=pltpu.CompilerParams(
            dimension_semantics=("parallel", "parallel"),    # megacore on v7x
            vmem_limit_bytes=vmem_limit),
    )(xp, xp, w_slab, bias)

    # Drop the padded tail and the (Wp - Wout) junk columns per row.  Wout<128
    # here, so in-kernel compaction would just trade these writes for masked
    # stores; a Wout>=128 consumer should take the extended layout instead.
    y = y_ext[:, :, :NE].reshape(B, Cout, Hout, Wp)[:, :, :, :Wout]
    return y


# ----------------------------------------------------------- pure-JAX ref ---

def basic_conv2d_ref(x, weight, bn_scale, bn_bias, padding, dilation):
    y = jax.lax.conv_general_dilated(
        x, weight,
        window_strides=(1, 1),
        padding=((padding, padding), (padding, padding)),
        rhs_dilation=(dilation, dilation),
        dimension_numbers=('NCHW', 'OIHW', 'NCHW'),
        precision=jax.lax.Precision.HIGHEST)
    y = y * bn_scale[None, :, None, None] + bn_bias[None, :, None, None]
    return jnp.maximum(y, 0.0)


# -------------------------------------------------------------------- main --

if __name__ == "__main__":
    configs = [
        # (B, Cin, Cout, H,  W,  k, pad, dil)
        (2, 16, 32, 16, 16, 3, 1, 1),   # single spatial tile
        (2,  8, 16, 32, 32, 3, 1, 1),   # multiple spatial tiles (halo path)
        (1, 16, 16, 16, 16, 1, 0, 1),   # 1x1 conv fast path
        (1, 16, 16, 16, 16, 3, 2, 2),   # dilated 3x3
    ]
    eps = 1e-5
    key = jax.random.PRNGKey(0)
    for (B, Cin, Cout, H, W, ksz, pad, dil) in configs:
        key, kx, kw_, kg, kb, km, kv = jax.random.split(key, 7)
        x = jax.random.normal(kx, (B, Cin, H, W), jnp.float32)
        weight = (jax.random.normal(kw_, (Cout, Cin, ksz, ksz), jnp.float32)
                  / np.sqrt(Cin * ksz * ksz)).astype(jnp.float32)

        # Eval-mode BatchNorm statistics / affine params folded into scale & bias.
        gamma = 1.0 + 0.1 * jax.random.normal(kg, (Cout,), jnp.float32)
        beta = 0.1 * jax.random.normal(kb, (Cout,), jnp.float32)
        running_mean = 0.1 * jax.random.normal(km, (Cout,), jnp.float32)
        running_var = jnp.abs(1.0 + 0.1 * jax.random.normal(kv, (Cout,), jnp.float32))
        bn_scale = gamma / jnp.sqrt(running_var + eps)
        bn_bias = beta - running_mean * bn_scale

        fwd = jax.jit(functools.partial(basic_conv2d, padding=pad, dilation=dil))
        out = jax.block_until_ready(fwd(x, weight, bn_scale, bn_bias))

        Hout = H + 2 * pad - dil * (ksz - 1)
        Wout = W + 2 * pad - dil * (ksz - 1)
        assert out.shape == (B, Cout, Hout, Wout), out.shape

        ref = basic_conv2d_ref(x, weight, bn_scale, bn_bias, pad, dil)
        np.testing.assert_allclose(np.asarray(out), np.asarray(ref),
                                   rtol=2e-2, atol=3e-2)

    print("KERNEL_OK")
</pallas_src>

<mosaic_0001>
module attributes {stable_mosaic.version = 11 : i64} {
  func.func @_conv_bn_relu_kernel(%arg0: i32, %arg1: i32, %arg2: memref<1x16x384xbf16, #tpu.memory_space<vmem>>, %arg3: memref<1x16x384xbf16, #tpu.memory_space<vmem>>, %arg4: memref<32x144xbf16, #tpu.memory_space<vmem>>, %arg5: memref<32x1xf32, #tpu.memory_space<vmem>>, %arg6: memref<1x32x384xf32, #tpu.memory_space<vmem>>, %arg7: memref<16x768xbf16, #tpu.memory_space<vmem>>, %arg8: memref<144x384xbf16, #tpu.memory_space<vmem>>) attributes {dimension_semantics = [#tpu.dimension_semantics<parallel>, #tpu.dimension_semantics<parallel>], iteration_bounds = array<i64: 2, 1>, scalar_prefetch = 0 : i64, scratch_operands = 2 : i64, tpu.core_type = #tpu.core_type<tc>, window_params = [{transform_indices = @transform_0, window_bounds = array<i64: 1, 16, 384>}, {transform_indices = @transform_1, window_bounds = array<i64: 1, 16, 384>}, {pipeline_mode = #tpu.pipeline_mode<synchronous>, transform_indices = @transform_2, window_bounds = array<i64: 32, 144>}, {pipeline_mode = #tpu.pipeline_mode<synchronous>, transform_indices = @transform_3, window_bounds = array<i64: 32, 1>}, {transform_indices = @transform_4, window_bounds = array<i64: 1, 32, 384>}]} {
    %c0 = arith.constant 0 : index
    %c0_0 = arith.constant 0 : index
    %c0_1 = arith.constant 0 : index
    %0 = vector.load %arg2[%c0, %c0_0, %c0_1] : memref<1x16x384xbf16, #tpu.memory_space<vmem>>, vector<1x16x384xbf16>
    %1 = vector.shape_cast %0 : vector<1x16x384xbf16> to vector<16x384xbf16>
    %c0_2 = arith.constant 0 : index
    %c0_3 = arith.constant 0 : index
    %2 = vector.load %arg7[%c0_2, %c0_3] : memref<16x768xbf16, #tpu.memory_space<vmem>>, vector<16x384xbf16>
    tpu.vector_store %arg7[%c0_2, %c0_3], %1 {strides = array<i32>} : memref<16x768xbf16, #tpu.memory_space<vmem>>, vector<16x384xbf16>,
    %c0_4 = arith.constant 0 : index
    %c0_5 = arith.constant 0 : index
    %c0_6 = arith.constant 0 : index
    %3 = vector.load %arg3[%c0_4, %c0_5, %c0_6] : memref<1x16x384xbf16, #tpu.memory_space<vmem>>, vector<1x16x384xbf16>
    %4 = vector.shape_cast %3 : vector<1x16x384xbf16> to vector<16x384xbf16>
    %c0_7 = arith.constant 0 : index
    %c384 = arith.constant 384 : index
    %5 = vector.load %arg7[%c0_7, %c384] : memref<16x768xbf16, #tpu.memory_space<vmem>>, vector<16x384xbf16>
    tpu.vector_store %arg7[%c0_7, %c384], %4 {strides = array<i32>} : memref<16x768xbf16, #tpu.memory_space<vmem>>, vector<16x384xbf16>,
    %c0_8 = arith.constant 0 : index
    %c0_9 = arith.constant 0 : index
    %6 = vector.load %arg7[%c0_8, %c0_9] : memref<16x768xbf16, #tpu.memory_space<vmem>>, vector<16x384xbf16>
    %c0_10 = arith.constant 0 : index
    %c0_11 = arith.constant 0 : index
    %7 = vector.load %arg8[%c0_10, %c0_11] : memref<144x384xbf16, #tpu.memory_space<vmem>>, vector<16x384xbf16>
    tpu.vector_store %arg8[%c0_10, %c0_11], %6 {strides = array<i32>} : memref<144x384xbf16, #tpu.memory_space<vmem>>, vector<16x384xbf16>,
    %c0_12 = arith.constant 0 : index
    %c1 = arith.constant 1 : index
    %8 = vector.load %arg7[%c0_12, %c1] : memref<16x768xbf16, #tpu.memory_space<vmem>>, vector<16x384xbf16>
    %c16 = arith.constant 16 : index
    %c0_13 = arith.constant 0 : index
    %9 = vector.load %arg8[%c16, %c0_13] : memref<144x384xbf16, #tpu.memory_space<vmem>>, vector<16x384xbf16>
    tpu.vector_store %arg8[%c16, %c0_13], %8 {strides = array<i32>} : memref<144x384xbf16, #tpu.memory_space<vmem>>, vector<16x384xbf16>,
    %c0_14 = arith.constant 0 : index
    %c2 = arith.constant 2 : index
    %10 = vector.load %arg7[%c0_14, %c2] : memref<16x768xbf16, #tpu.memory_space<vmem>>, vector<16x384xbf16>
    %c32 = arith.constant 32 : index
    %c0_15 = arith.constant 0 : index
    %11 = vector.load %arg8[%c32, %c0_15] : memref<144x384xbf16, #tpu.memory_space<vmem>>, vector<16x384xbf16>
    tpu.vector_store %arg8[%c32, %c0_15], %10 {strides = array<i32>} : memref<144x384xbf16, #tpu.memory_space<vmem>>, vector<16x384xbf16>,
    %c0_16 = arith.constant 0 : index
    %c18 = arith.constant 18 : index
    %12 = vector.load %arg7[%c0_16, %c18] : memref<16x768xbf16, #tpu.memory_space<vmem>>, vector<16x384xbf16>
    %c48 = arith.constant 48 : index
    %c0_17 = arith.constant 0 : index
    %13 = vector.load %arg8[%c48, %c0_17] : memref<144x384xbf16, #tpu.memory_space<vmem>>, vector<16x384xbf16>
    tpu.vector_store %arg8[%c48, %c0_17], %12 {strides = array<i32>} : memref<144x384xbf16, #tpu.memory_space<vmem>>, vector<16x384xbf16>,
    %c0_18 = arith.constant 0 : index
    %c19 = arith.constant 19 : index
    %14 = vector.load %arg7[%c0_18, %c19] : memref<16x768xbf16, #tpu.memory_space<vmem>>, vector<16x384xbf16>
    %c64 = arith.constant 64 : index
    %c0_19 = arith.constant 0 : index
    %15 = vector.load %arg8[%c64, %c0_19] : memref<144x384xbf16, #tpu.memory_space<vmem>>, vector<16x384xbf16>
    tpu.vector_store %arg8[%c64, %c0_19], %14 {strides = array<i32>} : memref<144x384xbf16, #tpu.memory_space<vmem>>, vector<16x384xbf16>,
    %c0_20 = arith.constant 0 : index
    %c20 = arith.constant 20 : index
    %16 = vector.load %arg7[%c0_20, %c20] : memref<16x768xbf16, #tpu.memory_space<vmem>>, vector<16x384xbf16>
    %c80 = arith.constant 80 : index
    %c0_21 = arith.constant 0 : index
    %17 = vector.load %arg8[%c80, %c0_21] : memref<144x384xbf16, #tpu.memory_space<vmem>>, vector<16x384xbf16>
    tpu.vector_store %arg8[%c80, %c0_21], %16 {strides = array<i32>} : memref<144x384xbf16, #tpu.memory_space<vmem>>, vector<16x384xbf16>,
    %c0_22 = arith.constant 0 : index
    %c36 = arith.constant 36 : index
    %18 = vector.load %arg7[%c0_22, %c36] : memref<16x768xbf16, #tpu.memory_space<vmem>>, vector<16x384xbf16>
    %c96 = arith.constant 96 : index
    %c0_23 = arith.constant 0 : index
    %19 = vector.load %arg8[%c96, %c0_23] : memref<144x384xbf16, #tpu.memory_space<vmem>>, vector<16x384xbf16>
    tpu.vector_store %arg8[%c96, %c0_23], %18 {strides = array<i32>} : memref<144x384xbf16, #tpu.memory_space<vmem>>, vector<16x384xbf16>,
    %c0_24 = arith.constant 0 : index
    %c37 = arith.constant 37 : index
    %20 = vector.load %arg7[%c0_24, %c37] : memref<16x768xbf16, #tpu.memory_space<vmem>>, vector<16x384xbf16>
    %c112 = arith.constant 112 : index
    %c0_25 = arith.constant 0 : index
    %21 = vector.load %arg8[%c112, %c0_25] : memref<144x384xbf16, #tpu.memory_space<vmem>>, vector<16x384xbf16>
    tpu.vector_store %arg8[%c112, %c0_25], %20 {strides = array<i32>} : memref<144x384xbf16, #tpu.memory_space<vmem>>, vector<16x384xbf16>,
    %c0_26 = arith.constant 0 : index
    %c38 = arith.constant 38 : index
    %22 = vector.load %arg7[%c0_26, %c38] : memref<16x768xbf16, #tpu.memory_space<vmem>>, vector<16x384xbf16>
    %c128 = arith.constant 128 : index
    %c0_27 = arith.constant 0 : index
    %23 = vector.load %arg8[%c128, %c0_27] : memref<144x384xbf16, #tpu.memory_space<vmem>>, vector<16x384xbf16>
    tpu.vector_store %arg8[%c128, %c0_27], %22 {strides = array<i32>} : memref<144x384xbf16, #tpu.memory_space<vmem>>, vector<16x384xbf16>,
    %c0_28 = arith.constant 0 : index
    %c0_29 = arith.constant 0 : index
    %24 = vector.load %arg4[%c0_28, %c0_29] : memref<32x144xbf16, #tpu.memory_space<vmem>>, vector<32x144xbf16>
    %c0_30 = arith.constant 0 : index
    %c0_31 = arith.constant 0 : index
    %25 = vector.load %arg8[%c0_30, %c0_31] : memref<144x384xbf16, #tpu.memory_space<vmem>>, vector<144x384xbf16>
    %cst = arith.constant dense<0.000000e+00> : vector<32x384xf32>
    %26 = tpu.matmul %24, %25, %cst {dimension_numbers = #tpu.dot_dimension_numbers<[1], [0], [0], [1], [0, 0, 1, 1], [], []>} : vector<32x144xbf16>, vector<144x384xbf16>, vector<32x384xf32> -> vector<32x384xf32>
    %c0_32 = arith.constant 0 : index
    %c0_33 = arith.constant 0 : index
    %27 = vector.load %arg5[%c0_32, %c0_33] : memref<32x1xf32, #tpu.memory_space<vmem>>, vector<32x1xf32>
    %28 = vector.broadcast %27 : vector<32x1xf32> to vector<32x384xf32>
    %29 = arith.addf %26, %28 : vector<32x384xf32>
    %cst_34 = arith.constant 0.000000e+00 : f32
    %30 = vector.broadcast %cst_34 : f32 to vector<32x384xf32>
    %31 = arith.maximumf %29, %30 : vector<32x384xf32>
    %c0_35 = arith.constant 0 : index
    %c0_36 = arith.constant 0 : index
    %c0_37 = arith.constant 0 : index
    %32 = vector.load %arg6[%c0_35, %c0_36, %c0_37] : memref<1x32x384xf32, #tpu.memory_space<vmem>>, vector<1x32x384xf32>
    %33 = vector.shape_cast %32 : vector<1x32x384xf32> to vector<32x384xf32>
    %34 = vector.shape_cast %31 : vector<32x384xf32> to vector<1x32x384xf32>
    tpu.vector_store %arg6[%c0_35, %c0_36, %c0_37], %34 {strides = array<i32>} : memref<1x32x384xf32, #tpu.memory_space<vmem>>, vector<1x32x384xf32>,
    return
  }
  func.func @transform_0(%arg0: i32, %arg1: i32) -> (i32, i32, i32) {
    %c0_i32 = arith.constant 0 : i32
    %c0_i32_0 = arith.constant 0 : i32
    return %arg0, %c0_i32, %arg1 : i32, i32, i32
  }
  func.func @transform_1(%arg0: i32, %arg1: i32) -> (i32, i32, i32) {
    %c1_i32 = arith.constant 1 : i32
    %0 = arith.addi %arg1, %c1_i32 : i32
    %c0_i32 = arith.constant 0 : i32
    %c0_i32_0 = arith.constant 0 : i32
    return %arg0, %c0_i32, %0 : i32, i32, i32
  }
  func.func @transform_2(%arg0: i32, %arg1: i32) -> (i32, i32) {
    %c0_i32 = arith.constant 0 : i32
    %c0_i32_0 = arith.constant 0 : i32
    %c0_i32_1 = arith.constant 0 : i32
    return %c0_i32, %c0_i32_0 : i32, i32
  }
  func.func @transform_3(%arg0: i32, %arg1: i32) -> (i32, i32) {
    %c0_i32 = arith.constant 0 : i32
    %c0_i32_0 = arith.constant 0 : i32
    %c0_i32_1 = arith.constant 0 : i32
    return %c0_i32, %c0_i32_0 : i32, i32
  }
  func.func @transform_4(%arg0: i32, %arg1: i32) -> (i32, i32, i32) {
    %c0_i32 = arith.constant 0 : i32
    %c0_i32_0 = arith.constant 0 : i32
    return %arg0, %c0_i32, %arg1 : i32, i32, i32
  }
}

</mosaic_0001>

<bundles_post_ra>
// kernel: basic_conv2d.1
= control target key start
LH: loop header
LB: loop body
LE: loop exit
PB: predicated region body
PF: predicated region fallthrough
CT: control target
= control target key end

     0   :  { %s1088_s15 = smov 0   ;;  %s1090_s16 = smov 0   ;;  %s1220_s0 = inlined_call_operand.vmem [shape: bf16[2,16,768], index: 0, kind: input, shape index: {}, may-alias: {0,1}]   ;;  %s1221_s1 = inlined_call_operand.vmem [shape: bf16[2,16,768], index: 1, kind: input, shape index: {}, may-alias: {0,1}]   ;;  %s1222_s2 = inlined_call_operand.vmem [shape: bf16[32,144], index: 2, kind: input, shape index: {}]   ;;  %s1223_s3 = inlined_call_operand.vmem [shape: f32[32,1], index: 3, kind: input, shape index: {}]   ;;  %s1224_s4 = inlined_call_operand.vmem [shape: f32[2,32,384], index: 4, kind: output, shape index: {}]  }
   0x1   :  { %s1092_s17 = smov 0   ;;  %s1094_s18 = smov 0  }
   0x2   :  { %s1096_s19 = smov 0  }
   0x3 LB: > { %s26_s20 = sadd.s32 1, %s1048_s18  ;;  %p42_p1 = scmp.ne.s32.totalorder %s1040_s16, %s1036_s15  ;;  %s1052_s19 = sphi %s1096_s19, %s14_s19   ;;  %s1048_s18 = sphi %s1094_s18, %s1229_s18   ;;  %s1044_s17 = sphi %s1092_s17, %s1228_s17   ;;  %s1040_s16 = sphi %s1090_s16, %s1227_s16   ;;  %s1036_s15 = sphi %s1088_s15, %s1226_s15  }
   0x4   : > { %p28_p0 = scmp.ge.s32.totalorder %s26_s20, 2  ;;  %p43_p2 = scmp.eq.s32.totalorder %s1052_s19, 0 }
   0x5   : > { %s35_s23 = sadd.s32 1, %s1040_s16  ;;  %p916_p5 = scmp.ge.s32.totalorder %s1052_s19, 2 }
   0x6   : > { %s1231_s20 = smov (%p28_p0, %s26_s20), 0  ;;  %p1119_p3 = por %p43_p2, %p42_p1 }
   0x7   : > { %s30_s22 = ssub.s32 %s1048_s18, %s1231_s20  ;;  %174 = sbr.rel (%p916_p5) target bundleno = 28 (0x1c), region = 24 }
   0x8   : > { %p33_p4 = scmp.eq.s32.totalorder %s30_s22, 0 }
   0xa   : > { %s1127_s24 = scalar_select %p33_p4, %s1040_s16, %s35_s23  }
   0xe   : > { %177 = sbr.rel (!%p1119_p3) target bundleno = 21 (0x15), region = 28  ;;  %s179_s25 = sand.u32 (%p1119_p3), 1, %s1040_s16  }
   0xf   : > { %s948_s26 = smul.u32 (%p1119_p3), 48, %s1048_s18 }
  0x10   : > { %s947_s27 = smul.u32 (%p1119_p3), 24, %s179_s25 }
  0x11   : > { %s186_s30 = scalar_lea.vmem (%p1119_p3), %s1220_s0, %s948_s26 }
  0x12   : > { %v201_v0 = vld [vmem:[%s186_s30] sm:$0xff] (%p1119_p3)  ;;  %v203_v1 = vld [vmem:[%s186_s30 + $0x18] sm:$0xff] (%p1119_p3)  ;;  %v918_v2 = vld [vmem:[%s186_s30 + $0x8] sm:$0xf] (%p1119_p3)  ;;  %s181_s5 = scalar_lea.vmem (%p1119_p3), [#allocation4], %s947_s27 }
  0x13   : > { %202 = vst [vmem:[%s181_s5] sm:$0xff] (%p1119_p3), %v201_v0  ;;  %204 = vst [vmem:[%s181_s5 + $0xc] sm:$0xff] (%p1119_p3), %v203_v1  ;;  %v920_v3 = vld [vmem:[%s186_s30 + $0x20] sm:$0xf] (%p1119_p3) }
  0x14   : > { %919 = vst [vmem:[%s181_s5 + $0x8] sm:$0xf] (%p1119_p3), %v918_v2  ;;  %921 = vst [vmem:[%s181_s5 + $0x14] sm:$0xf] (%p1119_p3), %v920_v3 }
  0x15 PF: > { %221 = sbr.rel (!%p1119_p3) target bundleno = 28 (0x1c), region = 54  ;;  %s223_s6 = sand.u32 (%p1119_p3), 1, %s1040_s16  }
  0x16   : > { %s922_s7 = smul.u32 (%p1119_p3), 48, %s1048_s18 }
  0x17   : > { %s949_s8 = smul.u32 (%p1119_p3), 24, %s223_s6 }
  0x18   : > { %s835_s11 = scalar_lea.vmem (%p1119_p3), %s1221_s1, %s922_s7 }
  0x19   : > { %v923_v4 = vld [vmem:[%s835_s11 + $0xc] sm:$0xff] (%p1119_p3)  ;;  %v924_v5 = vld [vmem:[%s835_s11 + $0x24] sm:$0xff] (%p1119_p3)  ;;  %v925_v6 = vld [vmem:[%s835_s11 + $0x14] sm:$0xf] (%p1119_p3)  ;;  %s225_s12 = scalar_lea.vmem (%p1119_p3), [#allocation5], %s949_s8 }
  0x1a   : > { %247 = vst [vmem:[%s225_s12] sm:$0xff] (%p1119_p3), %v923_v4  ;;  %249 = vst [vmem:[%s225_s12 + $0xc] sm:$0xff] (%p1119_p3), %v924_v5  ;;  %v927_v7 = vld [vmem:[%s835_s11 + $0x2c] sm:$0xf] (%p1119_p3) }
  0x1b   : > { %926 = vst [vmem:[%s225_s12 + $0x8] sm:$0xf] (%p1119_p3), %v925_v6  ;;  %928 = vst [vmem:[%s225_s12 + $0x14] sm:$0xf] (%p1119_p3), %v927_v7 }
  0x1c PF: > { %p929_p6 = scmp.ge.s32.totalorder %s1052_s19, 1  ;;  %p265_p7 = scmp.lt.s32.totalorder %s1052_s19, 3 }
  0x1e   : > { %p266_p8 = pnand %p929_p6, %p265_p7 }
  0x1f   : > { %s272_s13 = sand.u32 (!%p266_p8), 1, %s1036_s15   ;;  %v1054_v8 = vmov (!%p266_p8), 0   ;;  %s1055_s22 = smov (!%p266_p8), 127   ;;  %v1010_v13 = vld [vmem:[%s1222_s2 + $0x4] ss:$8 sps:$4 sm:$0xff] (!%p266_p8)   ;;  %vm659_vm0 = vcmask (!%p266_p8), 130048  }
  0x20   : > { %269 = sbr.rel (%p266_p8) target bundleno = 444 (0x1bc), region = 80  ;;  %719 = vmatprep.subr.bf16.mxu1 (!%p266_p8), %v1054_v8  ;;  %1001 = vset.pattern.permute.xlu0 (!%p266_p8), %v1054_v8  ;;  %s1056_s15 = smov (!%p266_p8), 126   ;;  %v617_v14 = vld [vmem:[%s1223_s3] sm:$0xff] (!%p266_p8)  ;;  %v618_v15 = vld [vmem:[%s1223_s3 + $0x8] sm:$0xff] (!%p266_p8)  ;;  %v620_v16 = vld [vmem:[%s1223_s3 + $0x18] sm:$0xff] (!%p266_p8)  ;;  %vm394_vm1 = vcmask (!%p266_p8), 1039360  }
  0x21   : > { %s950_s14 = smul.u32 (!%p266_p8), 24, %s272_s13  ;;  %1002 = vset.pattern.permute.xlu1 (!%p266_p8), %v1054_v8  ;;  %s1057_s25 = smov (!%p266_p8), 110   ;;  %941 = vmatprep.mubr.msk.bf16.mxu0 (!%p266_p8), %vm659_vm0, %v1010_v13  ;;  %v619_v17 = vld [vmem:[%s1223_s3 + $0x10] sm:$0xff] (!%p266_p8)  ;;  %vm420_vm2 = vcmask (!%p266_p8), 1031168   ;;  %vm446_vm3 = vcmask (!%p266_p8), 900096   ;;  %vm472_vm4 = vcmask (!%p266_p8), 891904  }
  0x22   : > { %s1058_s26 = smov (!%p266_p8), 109   ;;  %s1059_s27 = smov (!%p266_p8), 108   ;;  %943 = vmatprep.mubr.msk.bf16.mxu1 (!%p266_p8), %vm659_vm0, %v1010_v13  ;;  %vm498_vm5 = vcmask (!%p266_p8), 883712   ;;  %vm524_vm6 = vcmask (!%p266_p8), 752640   ;;  %vm550_vm7 = vcmask (!%p266_p8), 744448   ;;  %vm576_vm8 = vcmask (!%p266_p8), 736256  }
  0x23   : > { %s274_s21 = scalar_lea.vmem (!%p266_p8), [#allocation4], %s950_s14  ;;  %s281_s23 = scalar_lea.vmem (!%p266_p8), [#allocation5], %s950_s14 }
  0x24   : > { %v1003_v9 = vld [vmem:[%s274_s21 + $0x4] ss:$12 sps:$4 sm:$0xff] (!%p266_p8)   ;;  %v1005_v10 = vld [vmem:[%s274_s21] ss:$12 sps:$4 sm:$0xff] (!%p266_p8)   ;;  %v1006_v11 = vld [vmem:[%s274_s21 + $0x8] ss:$12 sps:$4 sm:$0xff] (!%p266_p8)  }
  0x25   : > { %388 = vrot.lane.b32.xlu0 (!%p266_p8), %v1003_v9, %s1055_s22  ;;  %666 = vmatprep.subr.bf16.mxu0 (!%p266_p8), %v1003_v9  ;;  %v1007_v12 = vld [vmem:[%s281_s23] ss:$12 sps:$4 sm:$0xff] (!%p266_p8)   ;;  %s1060_s28 = smov (!%p266_p8), 92   ;;  %s1061_s29 = smov (!%p266_p8), 91  }
  0x26   : > { %386 = vrot.lane.b32.xlu1 (!%p266_p8), %v1005_v10, %s1055_s22  ;;  %667 = vmatpush1.bf16.msra.mxu0 (!%p266_p8), %v1005_v10  ;;  %s1062_s6 = smov (!%p266_p8), 90   ;;  %p316_p9 = scmp.lt.s32.totalorder (!%p266_p8), %s1044_s17, 1 }
  0x27   : > { %720 = vmatpush1.bf16.msra.mxu1 %v1006_v11 }
  0x28   : > { %721 = vmatprep.subr.bf16.mxu1 %v1054_v8  ;;  %s1233_s17 = smov (!%p316_p9, %s1044_s17), 1 }
  0x29   : > { %390 = vrot.lane.b32.xlu0 %v1006_v11, %s1055_s22 }
  0x2a   : > { %392 = vrot.lane.b32.xlu1 %v1007_v12, %s1055_s22 }
  0x2d   : > { %414 = vrot.lane.b32.xlu0 %v1003_v9, %s1056_s15 }
  0x2e   : > { %416 = vrot.lane.b32.xlu1 %v1006_v11, %s1056_s15 }
  0x31   : > { %412 = vrot.lane.b32.xlu0 %v1005_v10, %s1056_s15 }
  0x32   : > { %418 = vrot.lane.b32.xlu1 %v1007_v12, %s1056_s15 }
  0x35   : > { %440 = vrot.lane.b32.xlu0 %v1003_v9, %s1057_s25 }
  0x36   : > { %442 = vrot.lane.b32.xlu1 %v1006_v11, %s1057_s25 }
  0x39   : > { %438 = vrot.lane.b32.xlu0 %v1005_v10, %s1057_s25 }
  0x3a   : > { %444 = vrot.lane.b32.xlu1 %v1007_v12, %s1057_s25 }
  0x3d   : > { %466 = vrot.lane.b32.xlu0 %v1003_v9, %s1058_s26 }
  0x3e   : > { %468 = vrot.lane.b32.xlu1 %v1006_v11, %s1058_s26 }
  0x41   : > { %464 = vrot.lane.b32.xlu0 %v1005_v10, %s1058_s26 }
  0x42   : > { %470 = vrot.lane.b32.xlu1 %v1007_v12, %s1058_s26 }
  0x45   : > { %492 = vrot.lane.b32.xlu0 %v1003_v9, %s1059_s27 }
  0x46   : > { %494 = vrot.lane.b32.xlu1 %v1006_v11, %s1059_s27 }
  0x49   : > { %490 = vrot.lane.b32.xlu0 %v1005_v10, %s1059_s27 }
  0x4a   : > { %496 = vrot.lane.b32.xlu1 %v1007_v12, %s1059_s27  ;;  %s951_s27 = smul.u32 96, %s1233_s17 }
  0x4c   : > { %s1191_s30 = scalar_lea.vmem %s1224_s4, %s951_s27 }
  0x4d   : > { %518 = vrot.lane.b32.xlu0 %v1003_v9, %s1060_s28 }
  0x4e   : > { %520 = vrot.lane.b32.xlu1 %v1006_v11, %s1060_s28 }
  0x51   : > { %516 = vrot.lane.b32.xlu0 %v1005_v10, %s1060_s28 }
  0x52   : > { %522 = vrot.lane.b32.xlu1 %v1007_v12, %s1060_s28 }
  0x55   : > { %544 = vrot.lane.b32.xlu0 %v1003_v9, %s1061_s29 }
  0x56   : > { %546 = vrot.lane.b32.xlu1 %v1006_v11, %s1061_s29 }
  0x59   : > { %542 = vrot.lane.b32.xlu0 %v1005_v10, %s1061_s29 }
  0x5a   : > { %548 = vrot.lane.b32.xlu1 %v1007_v12, %s1061_s29 }
  0x5d   : > { %570 = vrot.lane.b32.xlu0 %v1003_v9, %s1062_s6 }
  0x5e   : > { %572 = vrot.lane.b32.xlu1 %v1006_v11, %s1062_s6 }
  0x61   : > { %568 = vrot.lane.b32.xlu0 %v1005_v10, %s1062_s6  ;;  %v1008_v10 = vld [vmem:[%s1222_s2] ss:$8 sps:$4 sm:$0xff]  }
  0x62   : > { %574 = vrot.lane.b32.xlu1 %v1007_v12, %s1062_s6  ;;  %v1011_v12 = vld [vmem:[%s1222_s2 + $0x14] ss:$8 sps:$4 sm:$0xff]  }
  0x65   : > { %623 = vperm.xlu0 %1001, %v617_v14  }
  0x66   : > { %628 = vperm.xlu1 %1002, %v618_v15  }
  0x69   : > { %638 = vperm.xlu0 %1001, %v620_v16  }
  0x6a   : > { %633 = vperm.xlu1 %1002, %v619_v17  }
  0x97   : > { %v389_v18 = vpop.permute.xlu0 %388 }
  0x98   : > { %v387_v19 = vpop.permute.xlu1 %386 }
  0x99   : > { %v395_v24 = vsel %vm394_vm1, %v387_v19, %v389_v18 }
  0x9b   : > { %v391_v20 = vpop.permute.xlu0 %390 }
  0x9c   : > { %v393_v21 = vpop.permute.xlu1 %392  ;;  %v396_v22 = vsel %vm394_vm1, %v389_v18, %v391_v20 }
  0x9d   : > { %668 = vmatprep.subr.bf16.mxu0 %v396_v22  ;;  %v397_v23 = vsel %vm394_vm1, %v391_v20, %v393_v21 }
  0x9e   : > { %722 = vmatpush1.bf16.msra.mxu1 %v397_v23  ;;  %669 = vmatpush1.bf16.msra.mxu0 %v395_v24 }
  0x9f   : > { %v415_v25 = vpop.permute.xlu0 %414  ;;  %723 = vmatprep.subr.bf16.mxu1 %v1054_v8 }
  0xa0   : > { %v417_v26 = vpop.permute.xlu1 %416 }
  0xa1   : > { %v422_v27 = vsel %vm420_vm2, %v415_v25, %v417_v26 }
  0xa2   : > { %670 = vmatprep.subr.bf16.mxu0 %v422_v27 }
  0xa3   : > { %v413_v28 = vpop.permute.xlu0 %412 }
  0xa4   : > { %v419_v29 = vpop.permute.xlu1 %418  ;;  %v421_v30 = vsel %vm420_vm2, %v413_v28, %v415_v25 }
  0xa5   : > { %671 = vmatpush1.bf16.msra.mxu0 %v421_v30  ;;  %v423_v31 = vsel %vm420_vm2, %v417_v26, %v419_v29 }
  0xa6   : > { %724 = vmatpush1.bf16.msra.mxu1 %v423_v31 }
  0xa7   : > { %v441_v32 = vpop.permute.xlu0 %440  ;;  %725 = vmatprep.subr.bf16.mxu1 %v1054_v8 }
  0xa8   : > { %v443_v33 = vpop.permute.xlu1 %442 }
  0xa9   : > { %v448_v34 = vsel %vm446_vm3, %v441_v32, %v443_v33 }
  0xaa   : > { %672 = vmatprep.subr.bf16.mxu0 %v448_v34 }
  0xab   : > { %v439_v35 = vpop.permute.xlu0 %438 }
  0xac   : > { %v445_v36 = vpop.permute.xlu1 %444  ;;  %v447_v37 = vsel %vm446_vm3, %v439_v35, %v441_v32 }
  0xad   : > { %673 = vmatpush1.bf16.msra.mxu0 %v447_v37  ;;  %v449_v38 = vsel %vm446_vm3, %v443_v33, %v445_v36 }
  0xae   : > { %726 = vmatpush1.bf16.msra.mxu1 %v449_v38 }
  0xaf   : > { %v467_v39 = vpop.permute.xlu0 %466  ;;  %727 = vmatprep.subr.bf16.mxu1 %v1054_v8 }
  0xb0   : > { %v469_v40 = vpop.permute.xlu1 %468 }
  0xb1   : > { %v474_v41 = vsel %vm472_vm4, %v467_v39, %v469_v40 }
  0xb2   : > { %674 = vmatprep.subr.bf16.mxu0 %v474_v41 }
  0xb3   : > { %v465_v42 = vpop.permute.xlu0 %464 }
  0xb4   : > { %v471_v43 = vpop.permute.xlu1 %470  ;;  %v473_v44 = vsel %vm472_vm4, %v465_v42, %v467_v39 }
  0xb5   : > { %675 = vmatpush1.bf16.msra.mxu0 %v473_v44  ;;  %v475_v45 = vsel %vm472_vm4, %v469_v40, %v471_v43 }
  0xb6   : > { %728 = vmatpush1.bf16.msra.mxu1 %v475_v45 }
  0xb7   : > { %v493_v46 = vpop.permute.xlu0 %492  ;;  %729 = vmatprep.subr.bf16.mxu1 %v1054_v8 }
  0xb8   : > { %v495_v47 = vpop.permute.xlu1 %494 }
  0xb9   : > { %v500_v48 = vsel %vm498_vm5, %v493_v46, %v495_v47 }
  0xba   : > { %676 = vmatprep.subr.bf16.mxu0 %v500_v48 }
  0xbb   : > { %v491_v49 = vpop.permute.xlu0 %490 }
  0xbc   : > { %v497_v50 = vpop.permute.xlu1 %496  ;;  %v499_v51 = vsel %vm498_vm5, %v491_v49, %v493_v46 }
  0xbd   : > { %677 = vmatpush1.bf16.msra.mxu0 %v499_v51  ;;  %v501_v52 = vsel %vm498_vm5, %v495_v47, %v497_v50 }
  0xbe   : > { %730 = vmatpush1.bf16.msra.mxu1 %v501_v52 }
  0xbf   : > { %v519_v53 = vpop.permute.xlu0 %518  ;;  %731 = vmatprep.subr.bf16.mxu1 %v1054_v8 }
  0xc0   : > { %v521_v54 = vpop.permute.xlu1 %520 }
  0xc1   : > { %v526_v55 = vsel %vm524_vm6, %v519_v53, %v521_v54 }
  0xc2   : > { %678 = vmatprep.subr.bf16.mxu0 %v526_v55 }
  0xc3   : > { %v517_v56 = vpop.permute.xlu0 %516 }
  0xc4   : > { %v523_v57 = vpop.permute.xlu1 %522  ;;  %v525_v58 = vsel %vm524_vm6, %v517_v56, %v519_v53 }
  0xc5   : > { %679 = vmatpush1.bf16.msra.mxu0 %v525_v58  ;;  %v527_v59 = vsel %vm524_vm6, %v521_v54, %v523_v57 }
  0xc6   : > { %732 = vmatpush1.bf16.msra.mxu1 %v527_v59 }
  0xc7   : > { %v545_v60 = vpop.permute.xlu0 %544  ;;  %733 = vmatprep.subr.bf16.mxu1 %v1054_v8 }
  0xc8   : > { %v547_v61 = vpop.permute.xlu1 %546 }
  0xc9   : > { %v552_v62 = vsel %vm550_vm7, %v545_v60, %v547_v61 }
  0xca   : > { %680 = vmatprep.subr.bf16.mxu0 %v552_v62 }
  0xcb   : > { %v543_v63 = vpop.permute.xlu0 %542 }
  0xcc   : > { %v549_v0 = vpop.permute.xlu1 %548  ;;  %v551_v1 = vsel %vm550_vm7, %v543_v63, %v545_v60 }
  0xcd   : > { %681 = vmatpush1.bf16.msra.mxu0 %v551_v1  ;;  %v553_v2 = vsel %vm550_vm7, %v547_v61, %v549_v0 }
  0xce   : > { %734 = vmatpush1.bf16.msra.mxu1 %v553_v2 }
  0xcf   : > { %v571_v3 = vpop.permute.xlu0 %570  ;;  %735 = vmatprep.subr.bf16.mxu1 %v1054_v8  ;;  %v1013_v8 = vld [vmem:[%s1222_s2 + $0x10] ss:$8 sps:$4 sm:$0xff]  }
  0xd0   : > { %v573_v4 = vpop.permute.xlu1 %572 }
  0xd1   : > { %v578_v5 = vsel %vm576_vm8, %v571_v3, %v573_v4 }
  0xd2   : > { %682 = vmatprep.subr.bf16.mxu0 %v578_v5 }
  0xd3   : > { %v569_v6 = vpop.permute.xlu0 %568 }
  0xd4   : > { %v575_v7 = vpop.permute.xlu1 %574  ;;  %v577_v9 = vsel %vm576_vm8, %v569_v6, %v571_v3 }
  0xd5   : > { %683 = vmatpush1.bf16.msra.mxu0 %v577_v9  ;;  %v579_v11 = vsel %vm576_vm8, %v573_v4, %v575_v7 }
  0xd6   : > { %736 = vmatpush1.bf16.msra.mxu1 %v579_v11 }
  0xd8   : > { %699 = vmatmul.mubr.bf16.vlgmr.msra.gmra.mrb[0].mxu0 %v1008_v10 }
  0xd9   : > { %752 = vmatmul.mubr.bf16.vlgmr.msra.gmra.mrb[0].mxu1 %v1008_v10  ;;  %942 = vmatprep.mubr.msk.bf16.mxu0 %vm659_vm0, %v1011_v12 }
  0xda   : > { %944 = vmatprep.mubr.msk.bf16.mxu1 %vm659_vm0, %v1011_v12 }
  0xe0   : > { %709 = vmatmul.mubr.bf16.gmra.mrb[4].mxu0 %v1013_v8 }
  0xe1   : > { %760 = vmatmul.mubr.bf16.gmra.mrb[4].mxu1 %v1013_v8 }
  0xe4   : > { %v624_v13 = vpop.permute.xlu0 %623 }
  0xe5   : > { %v629_v15 = vpop.permute.xlu1 %628 }
  0xe8   : > { %v639_v36 = vpop.permute.xlu0 %638 }
  0xe9   : > { %v634_v35 = vpop.permute.xlu1 %633 }
 0x1ab   : > { %v700_v14 = vpop.f32.mrb[0].mxu0 }
 0x1ac   : > { %v701_v16 = vadd.f32 %v700_v14, %v624_v13  ;;  %v753_v17 = vpop.f32.mrb[0].mxu1  ;;  %v702_v18 = vpop.f32.mrb[1].mxu0 }
 0x1ad   : > { %v754_v19 = vadd.f32 %v753_v17, %v624_v13  ;;  %v703_v20 = vadd.f32 %v702_v18, %v624_v13  ;;  %v755_v21 = vpop.f32.mrb[1].mxu1  ;;  %v704_v22 = vpop.f32.mrb[2].mxu0 }
 0x1ae   : > { %v768_v23 = vmax.f32 %v701_v16, 0.0  ;;  %v756_v24 = vpop.f32.mrb[2].mxu1  ;;  %v705_v25 = vadd.f32 %v704_v22, %v629_v15  ;;  %v706_v26 = vpop.f32.mrb[3].mxu0 }
 0x1af   : > { %v770_v27 = vmax.f32 %v754_v19, 0.0  ;;  %v769_v28 = vmax.f32 %v703_v20, 0.0  ;;  %v757_v29 = vadd.f32 %v756_v24, %v629_v15  ;;  %v707_v30 = vadd.f32 %v706_v26, %v629_v15  ;;  %v758_v31 = vpop.f32.mrb[3].mxu1 }
 0x1b0   : > { %780 = vst [vmem:[%s1191_s30] sm:$0xff] %v768_v23  ;;  %v771_v32 = vmax.f32 %v705_v25, 0.0 }
 0x1b1   : > { %782 = vst [vmem:[%s1191_s30 + $0x10] sm:$0xff] %v770_v27  ;;  %781 = vst [vmem:[%s1191_s30 + $0x8] sm:$0xff] %v769_v28  ;;  %v773_v33 = vmax.f32 %v757_v29, 0.0  ;;  %v772_v34 = vmax.f32 %v707_v30, 0.0 }
 0x1b2   : > { %783 = vst [vmem:[%s1191_s30 + $0x18] sm:$0xff] %v771_v32 }
 0x1b3   : > { %785 = vst [vmem:[%s1191_s30 + $0x28] sm:$0xff] %v773_v33  ;;  %784 = vst [vmem:[%s1191_s30 + $0x20] sm:$0xff] %v772_v34  ;;  %v710_v37 = vpop.f32.mrb[4].mxu0 }
 0x1b4   : > { %v711_v38 = vadd.f32 %v710_v37, %v634_v35  ;;  %v761_v39 = vpop.f32.mrb[4].mxu1  ;;  %v712_v40 = vpop.f32.mrb[5].mxu0 }
 0x1b5   : > { %v762_v41 = vadd.f32 %v761_v39, %v634_v35  ;;  %v713_v42 = vadd.f32 %v712_v40, %v634_v35  ;;  %v763_v43 = vpop.f32.mrb[5].mxu1  ;;  %v714_v44 = vpop.f32.mrb[6].mxu0 }
 0x1b6   : > { %v774_v45 = vmax.f32 %v711_v38, 0.0  ;;  %v715_v46 = vadd.f32 %v714_v44, %v639_v36  ;;  %v764_v47 = vpop.f32.mrb[6].mxu1  ;;  %v716_v48 = vpop.f32.mrb[7].mxu0 }
 0x1b7   : > { %v776_v49 = vmax.f32 %v762_v41, 0.0  ;;  %v775_v50 = vmax.f32 %v713_v42, 0.0  ;;  %v765_v51 = vadd.f32 %v764_v47, %v639_v36  ;;  %v717_v52 = vadd.f32 %v716_v48, %v639_v36  ;;  %v766_v53 = vpop.f32.mrb[7].mxu1 }
 0x1b8   : > { %786 = vst [vmem:[%s1191_s30 + $0x30] sm:$0xff] %v774_v45  ;;  %v777_v54 = vmax.f32 %v715_v46, 0.0 }
 0x1b9   : > { %788 = vst [vmem:[%s1191_s30 + $0x40] sm:$0xff] %v776_v49  ;;  %787 = vst [vmem:[%s1191_s30 + $0x38] sm:$0xff] %v775_v50  ;;  %v779_v55 = vmax.f32 %v765_v51, 0.0  ;;  %v778_v56 = vmax.f32 %v717_v52, 0.0 }
 0x1ba   : > { %789 = vst [vmem:[%s1191_s30 + $0x48] sm:$0xff] %v777_v54 }
 0x1bb   : > { %791 = vst [vmem:[%s1191_s30 + $0x58] sm:$0xff] %v779_v55  ;;  %790 = vst [vmem:[%s1191_s30 + $0x50] sm:$0xff] %v778_v56 }
 0x1bc PF: > { %s14_s19 = sadd.s32 1, %s1052_s19   ;;  %s1226_s15 = smov %s1040_s16 }
 0x1bd   : > { %p11_p10 = scmp.ge.s32.totalorder %s14_s19, 4   ;;  %s1227_s16 = smov %s1127_s24 }
 0x1be   : > { %s1228_s17 = smov %s1048_s18  ;;  %s1229_s18 = smov %s1231_s20 }
 0x1bf   :  { %13 = sbr.rel (!%p11_p10) target bundleno = 3 (0x3), region = 143 }

</bundles_post_ra>
